<compile_context>
chip_gen: v6e
topology: v6e:2x2x1
jax: 0.10.0
libtpu: 0.0.40
codegen_flags: <defaults>
</compile_context>

<pallas_src>
import jax
import jax.numpy as jnp
from jax.experimental import pallas as pl
from jax.experimental.pallas import tpu as pltpu


# ----------------------------------------------------------------------------
# Fused patch-embed matmul kernel (single K step, weight resident in VMEM)
# ----------------------------------------------------------------------------

def _round_up(x, m):
    return (x + m - 1) // m * m


def _cdiv(a, b):
    return (a + b - 1) // b


def _patch_embed_kernel(x_ref, w_ref, posb_ref, o_ref):
    """o = X @ W + posb   (posb = pos + bias for token rows, cls embed for cls rows)."""
    acc = jnp.dot(x_ref[...], w_ref[...], preferred_element_type=jnp.float32)
    # Epilogue adds stay in f32 (free VPU slots under the MXU dot; v5e has no
    # bf16 VPU path) — only the *storage* of posb / output is bf16.
    o_ref[...] = (acc + posb_ref[...].astype(jnp.float32)).astype(o_ref.dtype)


def pallas_patch_embed_matmul(
    x_p, w_p, posb_p, *, out_dtype=jnp.bfloat16, tm_max=512,
):
    """Fused (x_p @ w_p) + posb_p over pre-padded bf16 operands.

    x_p:    (Mp, Kp)  padded im2col rows (zero rows at cls / padding positions)
    w_p:    (Kp, Np)  padded conv weight, (in, out) layout
    posb_p: (Mp, Np)  per-row additive term (pos+bias, or cls embedding)
    returns (Mp, Np) out_dtype
    """
    Mp, Kp = x_p.shape
    Kp2, Np = w_p.shape
    assert Kp == Kp2 and posb_p.shape == (Mp, Np)
    assert Mp % 16 == 0 and Kp % 128 == 0 and Np % 128 == 0

    # M tile: as large as possible (<=512), but try to split >=2 ways so v7x's
    # two TensorCores both get work on the "parallel" M axis.
    tm = min(tm_max, max(16, _round_up(_cdiv(Mp, 2), 16)))
    while Mp % tm != 0:
        tm -= 16
    grid = (Mp // tm,)

    itm = jnp.dtype(jnp.bfloat16).itemsize
    bytes_accessed = (
        Mp * Kp * itm                      # patches (streamed once)
        + Kp * Np * itm                    # weight  (resident, fetched once)
        + Mp * Np * itm                    # pos+bias
        + Mp * Np * jnp.dtype(out_dtype).itemsize
    )

    return pl.pallas_call(
        _patch_embed_kernel,
        grid=grid,
        in_specs=[
            pl.BlockSpec((tm, Kp), lambda i: (i, 0)),   # patches: one stream over M
            # Full weight block with a CONSTANT index -> DMA'd once, then the
            # revisit-skip keeps it resident in VMEM for all M tiles.
            pl.BlockSpec((Kp, Np), lambda i: (0, 0)),
            pl.BlockSpec((tm, Np), lambda i: (i, 0)),   # pos + bias (bf16 storage)
        ],
        out_specs=pl.BlockSpec((tm, Np), lambda i: (i, 0)),
        out_shape=jax.ShapeDtypeStruct((Mp, Np), out_dtype),
        compiler_params=pltpu.CompilerParams(
            dimension_semantics=("parallel",),
            # v5e default scoped VMEM is 16 MiB; the resident weight + 512-row
            # double-buffered tiles need ~20 MiB.  Keep <=48 MiB for v7x (64 MiB).
            vmem_limit_bytes=48 * 1024 * 1024,
        ),
        cost_estimate=pl.CostEstimate(
            flops=2 * Mp * Kp * Np,
            transcendentals=0,
            bytes_accessed=bytes_accessed,
        ),
    )(x_p, w_p, posb_p)


# ----------------------------------------------------------------------------
# JAX glue matching PatchEmbedding.forward semantics
# ----------------------------------------------------------------------------

def _im2col_patches(image, patch_size):
    """Strided Conv3d (kernel == stride == patch_size) as im2col rows."""
    C, D, H, W = image.shape
    pd, ph, pw = patch_size
    gd, gh, gw = D // pd, H // ph, W // pw
    x = image.reshape(C, gd, pd, gh, ph, gw, pw)
    x = x.transpose(1, 3, 5, 0, 2, 4, 6).reshape(gd * gh * gw, C * pd * ph * pw)
    return x, (gd, gh, gw)


def _resampled_pos_embed(pos_embed, grid):
    """position_embedding: (1, C, d0, h0, w0) -> (Ntok, C) for the given grid."""
    pe = pos_embed[0]
    C = pe.shape[0]
    if pe.shape[1:] != tuple(grid):
        # TODO(synk): exact spadop.resample semantics unknown; trilinear resize used.
        pe = jax.image.resize(pe, (C,) + tuple(grid), method="linear")
    return pe.reshape(C, -1).T  # rearrange('1 c d h w -> (d h w) c')


def patch_embedding_forward(params, cfg, image_list, patch_size_list,
                            *, compute_dtype=jnp.bfloat16,
                            out_dtype=jnp.bfloat16):
    """Returns (x, (segment_ids, seq_lens), shape_list).

    x: (1, Ltot, hidden) concatenated [cls_i, tokens_i] blocks per image.
    (segment_ids, seq_lens) is the BlockDiagonalMask equivalent: no dense
    (L, L) bias is materialized; a downstream attention kernel should consume
    the segment ids via scalar prefetch.
    """
    Hv = cfg["hidden_size"]
    C = cfg["in_channels"]
    pd, ph, pw = cfg["patch_size"]
    K = C * pd * ph * pw
    Kp = _round_up(K, 128)
    Np = _round_up(Hv, 128)

    bias = params["proj_b"].astype(jnp.float32)
    cls_tok = (params["cls_embedding"] + params["cls_pos_embed"]).astype(jnp.float32)
    cls_row = jnp.pad(cls_tok.astype(compute_dtype), ((0, 0), (0, Np - Hv)))

    # Build the kernel operands directly in the final concatenated row order
    # [cls_0, tok_0, cls_1, tok_1, ...]: cls rows have zero patch input and the
    # cls embedding in the additive operand, so the kernel output needs no
    # post-hoc per-image concatenation.
    x_rows, posb_rows, shape_list, seq_lens = [], [], [], []
    for image, patch_size in zip(image_list, patch_size_list):
        # TODO(synk): resample.Downsample(interpolate_2d=True) weight interpolation
        # for patch_size != config.patch_size is a checkpoint-loading concern;
        # a plain strided-conv patchify is implemented here.
        assert tuple(patch_size) == tuple(cfg["patch_size"])
        p, grid = _im2col_patches(image, patch_size)          # (n, K) f32
        pos = _resampled_pos_embed(params["position_embedding"], grid)  # (n, Hv)
        n = p.shape[0]
        shape_list.append(grid)
        seq_lens.append(n + 1)

        x_rows.append(jnp.zeros((1, Kp), compute_dtype))                    # cls
        x_rows.append(jnp.pad(p.astype(compute_dtype), ((0, 0), (0, Kp - K))))
        posb_rows.append(cls_row)                                           # cls
        posb_rows.append(jnp.pad((pos + bias[None, :]).astype(compute_dtype),
                                 ((0, 0), (0, Np - Hv))))

    Ltot = sum(seq_lens)
    tm_probe = min(512, max(16, _round_up(_cdiv(Ltot, 2), 16)))
    Mp = _round_up(Ltot, tm_probe)
    if Mp > Ltot:
        x_rows.append(jnp.zeros((Mp - Ltot, Kp), compute_dtype))
        posb_rows.append(jnp.zeros((Mp - Ltot, Np), compute_dtype))

    x_p = jnp.concatenate(x_rows, axis=0)           # (Mp, Kp) bf16
    posb_p = jnp.concatenate(posb_rows, axis=0)     # (Mp, Np) bf16
    w_p = jnp.zeros((Kp, Np), compute_dtype).at[:K, :Hv].set(
        params["proj_w"].astype(compute_dtype))

    out = pallas_patch_embed_matmul(x_p, w_p, posb_p, out_dtype=out_dtype)

    x = out[:Ltot, :Hv][None]                        # (1, Ltot, hidden)
    segment_ids = jnp.concatenate(
        [jnp.full((n,), i, jnp.int32) for i, n in enumerate(seq_lens)]
    )
    return x, (segment_ids, tuple(seq_lens)), shape_list


# ----------------------------------------------------------------------------
# Deterministic synthetic parameters (module __init__ shapes)
# ----------------------------------------------------------------------------

def init_params(key, cfg):
    Hv = cfg["hidden_size"]
    C = cfg["in_channels"]
    pd, ph, pw = cfg["patch_size"]
    k1, k2, k3, k4, k5 = jax.random.split(key, 5)
    nrm = lambda k, s: jax.random.normal(k, s, jnp.float32) * 0.02
    return {
        # Conv3d weight stored transposed as (in=C*pd*ph*pw, out=hidden).
        "proj_w": nrm(k1, (C * pd * ph * pw, Hv)),
        "proj_b": nrm(k2, (Hv,)),
        "cls_embedding": nrm(k3, (1, Hv)),
        "cls_pos_embed": nrm(k4, (1, Hv)),
        "position_embedding": nrm(k5, (1, Hv) + tuple(cfg["pos_embed_shape"])),
    }


def _reference_forward(params, cfg, image_list, patch_size_list):
    """Pure-JAX f32 reference for a correctness sanity check."""
    x_list = []
    for image, patch_size in zip(image_list, patch_size_list):
        p, grid = _im2col_patches(image, patch_size)
        pos = _resampled_pos_embed(params["position_embedding"], grid)
        tok = p @ params["proj_w"] + params["proj_b"][None, :] + pos
        cls = params["cls_embedding"] + params["cls_pos_embed"]
        x_list.append(jnp.concatenate([cls, tok], axis=0))
    return jnp.concatenate(x_list, axis=0)[None]


if __name__ == "__main__":
    cfg = {
        "in_channels": 3,
        "hidden_size": 32,
        "patch_size": (2, 4, 4),
        "pos_embed_shape": (2, 2, 2),
    }
    params = init_params(jax.random.PRNGKey(0), cfg)

    k1, k2 = jax.random.split(jax.random.PRNGKey(0))
    image_list = [
        jax.random.normal(k1, (3, 4, 8, 8), jnp.float32),   # grid (2,2,2) -> 8 tokens
        jax.random.normal(k2, (3, 2, 8, 8), jnp.float32),   # grid (1,2,2) -> 4 tokens
    ]
    patch_size_list = [(2, 4, 4), (2, 4, 4)]

    x, (segment_ids, seq_lens), shape_list = patch_embedding_forward(
        params, cfg, image_list, patch_size_list
    )
    x = jax.block_until_ready(x)
    segment_ids = jax.block_until_ready(segment_ids)

    # Sanity check against a pure-JAX f32 reference (bf16 matmul/storage tolerance).
    ref = jax.block_until_ready(
        _reference_forward(params, cfg, image_list, patch_size_list))
    assert x.shape == ref.shape, (x.shape, ref.shape)
    max_err = float(jnp.max(jnp.abs(x.astype(jnp.float32) - ref)))
    assert max_err < 5e-2, f"max abs error {max_err}"
    assert seq_lens == (9, 5)
    assert shape_list == [(2, 2, 2), (1, 2, 2)]

    print("KERNEL_OK")
</pallas_src>

<mosaic_0001>
module attributes {stable_mosaic.version = 11 : i64} {
  func.func @_patch_embed_kernel(%arg0: i32, %arg1: memref<16x128xbf16, #tpu.memory_space<vmem>>, %arg2: memref<128x128xbf16, #tpu.memory_space<vmem>>, %arg3: memref<16x128xbf16, #tpu.memory_space<vmem>>, %arg4: memref<16x128xbf16, #tpu.memory_space<vmem>>) attributes {dimension_semantics = [#tpu.dimension_semantics<parallel>], iteration_bounds = array<i64: 1>, scalar_prefetch = 0 : i64, scratch_operands = 0 : i64, tpu.core_type = #tpu.core_type<tc>, window_params = [{transform_indices = @transform_0, window_bounds = array<i64: 16, 128>}, {pipeline_mode = #tpu.pipeline_mode<synchronous>, transform_indices = @transform_1, window_bounds = array<i64: 128, 128>}, {transform_indices = @transform_2, window_bounds = array<i64: 16, 128>}, {transform_indices = @transform_3, window_bounds = array<i64: 16, 128>}]} {
    %c0 = arith.constant 0 : index
    %c0_0 = arith.constant 0 : index
    %0 = vector.load %arg1[%c0, %c0_0] : memref<16x128xbf16, #tpu.memory_space<vmem>>, vector<16x128xbf16>
    %c0_1 = arith.constant 0 : index
    %c0_2 = arith.constant 0 : index
    %1 = vector.load %arg2[%c0_1, %c0_2] : memref<128x128xbf16, #tpu.memory_space<vmem>>, vector<128x128xbf16>
    %cst = arith.constant dense<0.000000e+00> : vector<16x128xf32>
    %2 = tpu.matmul %0, %1, %cst {dimension_numbers = #tpu.dot_dimension_numbers<[1], [0], [0], [1], [0, 0, 1, 1], [], []>} : vector<16x128xbf16>, vector<128x128xbf16>, vector<16x128xf32> -> vector<16x128xf32>
    %c0_3 = arith.constant 0 : index
    %c0_4 = arith.constant 0 : index
    %3 = vector.load %arg3[%c0_3, %c0_4] : memref<16x128xbf16, #tpu.memory_space<vmem>>, vector<16x128xbf16>
    %4 = arith.extf %3 : vector<16x128xbf16> to vector<16x128xf32>
    %5 = arith.addf %2, %4 : vector<16x128xf32>
    %6 = arith.truncf %5 : vector<16x128xf32> to vector<16x128xbf16>
    %c0_5 = arith.constant 0 : index
    %c0_6 = arith.constant 0 : index
    %7 = vector.load %arg4[%c0_5, %c0_6] : memref<16x128xbf16, #tpu.memory_space<vmem>>, vector<16x128xbf16>
    tpu.vector_store %arg4[%c0_5, %c0_6], %6 {strides = array<i32>} : memref<16x128xbf16, #tpu.memory_space<vmem>>, vector<16x128xbf16>,
    return
  }
  func.func @transform_0(%arg0: i32) -> (i32, i32) {
    %c0_i32 = arith.constant 0 : i32
    %c0_i32_0 = arith.constant 0 : i32
    return %arg0, %c0_i32 : i32, i32
  }
  func.func @transform_1(%arg0: i32) -> (i32, i32) {
    %c0_i32 = arith.constant 0 : i32
    %c0_i32_0 = arith.constant 0 : i32
    %c0_i32_1 = arith.constant 0 : i32
    return %c0_i32, %c0_i32_0 : i32, i32
  }
  func.func @transform_2(%arg0: i32) -> (i32, i32) {
    %c0_i32 = arith.constant 0 : i32
    %c0_i32_0 = arith.constant 0 : i32
    return %arg0, %c0_i32 : i32, i32
  }
  func.func @transform_3(%arg0: i32) -> (i32, i32) {
    %c0_i32 = arith.constant 0 : i32
    %c0_i32_0 = arith.constant 0 : i32
    return %arg0, %c0_i32 : i32, i32
  }
}

</mosaic_0001>

<bundles_post_ra>
// kernel: tpu_custom_call.1
= control target key start
LH: loop header
LB: loop body
LE: loop exit
PB: predicated region body
PF: predicated region fallthrough
CT: control target
= control target key end

     0   :  { %8 = vsyncpa [#allocation3], 0  ;;  %s408_s0 = inlined_call_operand.hbm [shape: bf16[16,128], index: 0, kind: input, shape index: {}]   ;;  %s409_s1 = inlined_call_operand.hbm [shape: bf16[128,128], index: 1, kind: input, shape index: {}]   ;;  %s410_s2 = inlined_call_operand.hbm [shape: bf16[16,128], index: 2, kind: input, shape index: {}]   ;;  %s411_s3 = inlined_call_operand.hbm [shape: bf16[16,128], index: 3, kind: output, shape index: {}]  }
   0x1   :  { %9 = vsyncpa [#allocation6], 0 }
   0x2   :  { %10 = vsyncpa [#allocation4], 0  ;;  %s356_s12 = smov [#allocation5]   ;;  %s357_s14 = smov [#allocation2]  }
   0x3   :  { %s28_s13 = sshll.u32 %s356_s12, 4  ;;  %s16_s15 = sshll.u32 %s357_s14, 4  ;;  %s29_s13 = int_to_ptr.vmem [resolvable:$true] %s28_s13  ;;  %s17_s15 = int_to_ptr.vmem [resolvable:$true] %s16_s15 }
   0x4   :  { %s278_s16 = scalar_lea.vmem %s29_s13, 1024  ;;  %p283_p1 = scmp.lt.s32.totalorder %s29_s13, %s29_s13 }
   0x5   :  { %p279_p0 = scmp.ne.s32.totalorder %s29_s13, %s278_s16  ;;  %p284_p2 = scmp.lt.s32.totalorder %s278_s16, %s278_s16 }
   0x7   :  { %p285_p3 = por %p284_p2, %p283_p1 }
   0x9   :  { %p286_p4 = pnand %p285_p3, %p279_p0 }
   0xb   :  { %289 = shalt.err (!%p286_p4)
}
   0xc   :  { %s358_s17 = smov 64   ;;  %s359_s18 = smov 4  }
   0xd   :  { %34 = dma.hbm_to_vmem [thread:$0]  %s409_s1, 1024, %s29_s13, [#allocation6], %s358_s17, %s358_s17, %s359_s18  }
   0xe   :  { %s298_s21 = scalar_lea.vmem %s17_s15, 128  ;;  %p303_p6 = scmp.lt.s32.totalorder %s17_s15, %s17_s15 }
   0xf   :  { %p299_p5 = scmp.ne.s32.totalorder %s17_s15, %s298_s21  ;;  %p304_p7 = scmp.lt.s32.totalorder %s298_s21, %s298_s21 }
  0x11   :  { %p305_p8 = por %p304_p7, %p303_p6 }
  0x13   :  { %p306_p9 = pnand %p305_p8, %p299_p5 }
  0x15   :  { %309 = shalt.err (!%p306_p9)
}
  0x16   :  { %22 = dma.hbm_to_vmem [thread:$0]  %s408_s0, 128, %s17_s15, [#allocation3], %s358_s17, %s358_s17, %s359_s18  }
  0x17   :  { %s360_s24 = smov [#allocation7]  }
  0x18   :  { %s40_s25 = sshll.u32 %s360_s24, 4  ;;  %s41_s25 = int_to_ptr.vmem [resolvable:$true] %s40_s25 }
  0x19   :  { %s318_s26 = scalar_lea.vmem %s41_s25, 128  ;;  %p323_p11 = scmp.lt.s32.totalorder %s41_s25, %s41_s25 }
  0x1a   :  { %p319_p10 = scmp.ne.s32.totalorder %s41_s25, %s318_s26  ;;  %p324_p12 = scmp.lt.s32.totalorder %s318_s26, %s318_s26 }
  0x1c   :  { %p325_p13 = por %p324_p12, %p323_p11 }
  0x1e   :  { %p326_p0 = pnand %p325_p13, %p319_p10 }
  0x20   :  { %329 = shalt.err (!%p326_p0)
}
  0x21   :  { %46 = dma.hbm_to_vmem [thread:$0]  %s410_s2, 128, %s41_s25, [#allocation6], %s358_s17, %s358_s17, %s359_s18  }
  0x22   :  { %350 = dma.done.wait [#allocation3], 128  }
  0x23   :  { %351 = vsyncadd [#allocation3], 4294967168 }
  0x24   :  { %352 = dma.done.wait [#allocation6], 1152  }
  0x25   :  { %353 = vsyncadd [#allocation6], 4294966144  ;;  %v361_v0 = vmov 0.0   ;;  %vm362_vm0 = vmmov 0   ;;  %v261_v1 = vld [vmem:[#allocation5 + $0x38] sm:$0xff]   ;;  %v262_v2 = vld [vmem:[#allocation5 + $0x30] sm:$0xff]  }
  0x26   :  { %233 = vmatprep.subr.bf16.mxu0 %v361_v0  ;;  %249 = vmatprep.mubr.msk.bf16.mxu0 %vm362_vm0, %v361_v0  ;;  %v263_v3 = vld [vmem:[#allocation5 + $0x28] sm:$0xff]   ;;  %v264_v4 = vld [vmem:[#allocation5 + $0x20] sm:$0xff]   ;;  %v265_v5 = vld [vmem:[#allocation5 + $0x18] sm:$0xff]   ;;  %s363_s0 = smov [#allocation8]  }
  0x27   :  { %234 = vmatpush3.bf16.msra.mxu0 %v261_v1  ;;  %v266_v6 = vld [vmem:[#allocation5 + $0x10] sm:$0xff]   ;;  %v267_v7 = vld [vmem:[#allocation5 + $0x8] sm:$0xff]   ;;  %v268_v8 = vld [vmem:[#allocation5] sm:$0xff]   ;;  %s189_s2 = sshll.u32 %s363_s0, 4  ;;  %s190_s2 = int_to_ptr.vmem [resolvable:$true] %s189_s2 }
  0x28   :  { %235 = vmatprep.subr.bf16.mxu0 %v361_v0  ;;  %v269_v9 = vld [vmem:[#allocation2] sm:$0xff]   ;;  %v216_v10 = vld [vmem:[#allocation7] sm:$0xff]   ;;  %s330_s28 = scalar_lea.vmem %s190_s2, 128  ;;  %p335_p2 = scmp.lt.s32.totalorder %s190_s2, %s190_s2 }
  0x29   :  { %v217_v12 = vunpack.c.l.bf16 %v216_v10  ;;  %v218_v13 = vunpack.c.h.bf16 %v216_v10  ;;  %p331_p1 = scmp.ne.s32.totalorder %s190_s2, %s330_s28  ;;  %p336_p3 = scmp.lt.s32.totalorder %s330_s28, %s330_s28 }
  0x2b   :  { %236 = vmatpush3.bf16.msra.mxu0 %v262_v2  ;;  %p337_p4 = por %p336_p3, %p335_p2 }
  0x2c   :  { %237 = vmatprep.subr.bf16.mxu0 %v361_v0 }
  0x2d   :  { %p338_p5 = pnand %p337_p4, %p331_p1 }
  0x2f   :  { %238 = vmatpush3.bf16.msra.mxu0 %v263_v3 }
  0x30   :  { %239 = vmatprep.subr.bf16.mxu0 %v361_v0 }
  0x33   :  { %240 = vmatpush3.bf16.msra.mxu0 %v264_v4 }
  0x34   :  { %241 = vmatprep.subr.bf16.mxu0 %v361_v0 }
  0x37   :  { %242 = vmatpush3.bf16.msra.mxu0 %v265_v5 }
  0x38   :  { %243 = vmatprep.subr.bf16.mxu0 %v361_v0 }
  0x3b   :  { %244 = vmatpush3.bf16.msra.mxu0 %v266_v6 }
  0x3c   :  { %245 = vmatprep.subr.bf16.mxu0 %v361_v0 }
  0x3f   :  { %246 = vmatpush3.bf16.msra.mxu0 %v267_v7 }
  0x40   :  { %247 = vmatprep.subr.bf16.mxu0 %v361_v0 }
  0x43   :  { %248 = vmatpush3.bf16.msra.mxu0 %v268_v8 }
  0x46   :  { %250 = vmatmul.mubr.bf16.vlgmr.msra.gmra.mxu0 %v269_v9 }
 0x106   :  { %v167_v11 = vpop.f32.mrf.mxu0 }
 0x107   :  { %v168_v16 = vadd.f32 %v217_v12, %v167_v11 }
 0x108   :  { %v251_v14 = vpop.f32.mrf.mxu0 }
 0x10a   :  { %v170_v15 = vpop.f32.mrf.mxu0 }
 0x10b   :  { %v171_v17 = vadd.f32 %v218_v13, %v170_v15 }
 0x10c   :  { %v252_v18 = vpop.f32.mrf.mxu0 }
 0x10d   :  { %v222_v19 = vpack.c.bf16 %v171_v17, %v168_v16 }
 0x10f   :  { %223 = vst [vmem:[#allocation8] sm:$0xff] %v222_v19  }
 0x110   :  { %341 = shalt.err (!%p338_p5)
}
 0x111   :  { %195 = dma.vmem_to_hbm [thread:$0]  %s190_s2, 128, %s411_s3, [#allocation4], %s358_s17, %s358_s17, %s359_s18  }
 0x112   :  { %354 = dma.done.wait [#allocation4], 128  }
 0x113   :  { %355 = vsyncadd [#allocation4], 4294967168 }
 0x114   :  { %199 = vsyncpa [#allocation3], 1 }
 0x115   :  { %200 = vsyncpa [#allocation6], 1 }
 0x116   :  { %201 = vsyncpa [#allocation4], 1 }

</bundles_post_ra>
